<compile_context>
chip_gen: v6e
topology: v6e:2x2x1
jax: 0.10.0
libtpu: 0.0.40
codegen_flags: <defaults>
</compile_context>

<pallas_src>
import jax
import jax.numpy as jnp
from jax.experimental import pallas as pl
from jax.experimental.pallas import tpu as pltpu

# Rows of 128 samples per grid step.  2048 rows = 256K samples (~3 MiB per step:
# 2 MiB x + 1 MiB out), double-buffered ~6 MiB VMEM -> fits every generation.
_BLOCK_ROWS = 2048


def _round_up(n, m):
    return ((n + m - 1) // m) * m


def mlp_kernel(x_ref, w1_ref, b1_ref, w2h_ref, b2h_ref, o_ref):
    # x_ref:  [2, TR, 128] VMEM  (feature-major; batch packed as full (8,128) vregs)
    # w1_ref: [10] SMEM  (row-major flatten of [in=2, out=5])
    # b1_ref: [5]  SMEM
    # w2h_ref:[5]  SMEM  (already scaled by 0.5)
    # b2h_ref:[1]  SMEM  (already scaled by 0.5)
    # o_ref:  [TR, 128] VMEM (lane-dense output)
    x0 = x_ref[0]                                    # [TR, 128]
    x1 = x_ref[1]                                    # [TR, 128]

    # Hidden layer + ReLU + (0.5-scaled) second layer, fully unrolled VPU FMAs.
    y = None
    for j in range(5):
        h = x0 * w1_ref[j] + x1 * w1_ref[5 + j] + b1_ref[j]    # [TR, 128]
        h = jnp.maximum(h, 0.0)                                 # ReLU
        c = h * w2h_ref[j]                                      # 0.5 already folded in
        y = c if y is None else y + c
    y = y + b2h_ref[0]                                          # y == 0.5 * logits

    # sigmoid(z) == 0.5*tanh(0.5*z) + 0.5 ; here y is already 0.5*z -> one EUP tanh.
    o_ref[...] = jnp.tanh(y) * 0.5 + 0.5


@jax.jit
def mlp_forward(x, w1, b1, w2, b2):
    """x: [B, 2] f32. Returns [B, 1] f32 (same semantics as the PyTorch MLP)."""
    B = x.shape[0]

    rows = -(-B // 128)                      # ceil(B / 128)
    if rows <= _BLOCK_ROWS:
        tr = max(rows, 1)                    # single block == full array (no (8,128) rule)
        rows_p = tr
    else:
        tr = _BLOCK_ROWS                     # multiple of 8 -> satisfies (8,128) tiling
        rows_p = _round_up(rows, tr)
    bp = rows_p * 128

    # Feature-major, lane-dense layout [2, rows_p, 128]; pad + transpose fuse under jit.
    xt = jnp.pad(x.T.astype(jnp.float32), ((0, 0), (0, bp - B))).reshape(2, rows_p, 128)

    # Parameter prep (tiny, fused under jit): flatten w1, fold 0.5 into second layer.
    w1f = w1.reshape(-1).astype(jnp.float32)             # [10]
    b1f = b1.astype(jnp.float32)                         # [5]
    w2h = (0.5 * w2).astype(jnp.float32)                 # [5]
    b2h = (0.5 * b2).astype(jnp.float32)                 # [1]

    out = pl.pallas_call(
        mlp_kernel,
        out_shape=jax.ShapeDtypeStruct((rows_p, 128), jnp.float32),
        grid=(rows_p // tr,),
        in_specs=[
            pl.BlockSpec((2, tr, 128), lambda i: (0, i, 0)),    # x  [2, TR, 128] VMEM
            pl.BlockSpec(memory_space=pltpu.SMEM),              # w1 flat [10]
            pl.BlockSpec(memory_space=pltpu.SMEM),              # b1 [5]
            pl.BlockSpec(memory_space=pltpu.SMEM),              # w2 * 0.5 [5]
            pl.BlockSpec(memory_space=pltpu.SMEM),              # b2 * 0.5 [1]
        ],
        out_specs=pl.BlockSpec((tr, 128), lambda i: (i, 0)),    # lane-dense output
        compiler_params=pltpu.CompilerParams(
            dimension_semantics=("parallel",),                  # megacore sharding on v7x
            vmem_limit_bytes=48 * 1024 * 1024,                  # headroom on all generations
        ),
    )(xt, w1f, b1f, w2h, b2h)

    # Back to the PyTorch-shaped [B, 1] result (slice fuses under jit).
    return out.reshape(bp)[:B].reshape(B, 1)


def init_params(key):
    # Deterministic init mimicking PyTorch's Linear default: U(-1/sqrt(fan_in), +1/sqrt(fan_in)).
    # Weights stored as [in_features, out_features], so forward computes x @ W + b
    # (identical math to torch's x @ W.T + b).
    k1, k2, k3, k4 = jax.random.split(key, 4)
    lim1 = 1.0 / jnp.sqrt(2.0)
    lim2 = 1.0 / jnp.sqrt(5.0)
    w1 = jax.random.uniform(k1, (2, 5), jnp.float32, -lim1, lim1)
    b1 = jax.random.uniform(k2, (5,), jnp.float32, -lim1, lim1)
    w2 = jax.random.uniform(k3, (5,), jnp.float32, -lim2, lim2)
    b2 = jax.random.uniform(k4, (1,), jnp.float32, -lim2, lim2)
    return w1, b1, w2, b2


if __name__ == "__main__":
    key = jax.random.PRNGKey(0)
    kx, kp = jax.random.split(key)
    B = 8
    x = jax.random.normal(kx, (B, 2), jnp.float32)
    w1, b1, w2, b2 = init_params(kp)

    out = mlp_forward(x, w1, b1, w2, b2)
    jax.block_until_ready(out)

    # Reference check in plain JAX.
    h_ref = jnp.maximum(x @ w1 + b1[None, :], 0.0)
    y_ref = jax.nn.sigmoid(h_ref @ w2[:, None] + b2[None, :])
    assert out.shape == (B, 1)
    assert jnp.allclose(out, y_ref, atol=1e-5), "mismatch vs reference"

    print("KERNEL_OK")
</pallas_src>

<mosaic_0001>
module attributes {stable_mosaic.version = 11 : i64} {
  func.func @mlp_kernel(%arg0: i32, %arg1: memref<2x1x128xf32, #tpu.memory_space<vmem>>, %arg2: memref<10xf32, #tpu.memory_space<smem>>, %arg3: memref<5xf32, #tpu.memory_space<smem>>, %arg4: memref<5xf32, #tpu.memory_space<smem>>, %arg5: memref<1xf32, #tpu.memory_space<smem>>, %arg6: memref<1x128xf32, #tpu.memory_space<vmem>>) attributes {dimension_semantics = [#tpu.dimension_semantics<parallel>], iteration_bounds = array<i64: 1>, scalar_prefetch = 0 : i64, scratch_operands = 0 : i64, tpu.core_type = #tpu.core_type<tc>, window_params = [{transform_indices = @transform_0, window_bounds = array<i64: 2, 1, 128>}, {transform_indices = @transform_1, window_bounds = array<i64: 10>}, {transform_indices = @transform_2, window_bounds = array<i64: 5>}, {transform_indices = @transform_3, window_bounds = array<i64: 5>}, {transform_indices = @transform_4, window_bounds = array<i64: 1>}, {transform_indices = @transform_5, window_bounds = array<i64: 1, 128>}]} {
    %c0 = arith.constant 0 : index
    %c0_0 = arith.constant 0 : index
    %c0_1 = arith.constant 0 : index
    %0 = vector.load %arg1[%c0, %c0_0, %c0_1] : memref<2x1x128xf32, #tpu.memory_space<vmem>>, vector<1x1x128xf32>
    %1 = vector.shape_cast %0 : vector<1x1x128xf32> to vector<1x128xf32>
    %c1 = arith.constant 1 : index
    %c0_2 = arith.constant 0 : index
    %c0_3 = arith.constant 0 : index
    %2 = vector.load %arg1[%c1, %c0_2, %c0_3] : memref<2x1x128xf32, #tpu.memory_space<vmem>>, vector<1x1x128xf32>
    %3 = vector.shape_cast %2 : vector<1x1x128xf32> to vector<1x128xf32>
    %c0_4 = arith.constant 0 : index
    %4 = memref.load %arg2[%c0_4] : memref<10xf32, #tpu.memory_space<smem>>
    %5 = vector.broadcast %4 : f32 to vector<1x128xf32>
    %6 = arith.mulf %1, %5 : vector<1x128xf32>
    %c5 = arith.constant 5 : index
    %7 = memref.load %arg2[%c5] : memref<10xf32, #tpu.memory_space<smem>>
    %8 = vector.broadcast %7 : f32 to vector<1x128xf32>
    %9 = arith.mulf %3, %8 : vector<1x128xf32>
    %10 = arith.addf %6, %9 : vector<1x128xf32>
    %c0_5 = arith.constant 0 : index
    %11 = memref.load %arg3[%c0_5] : memref<5xf32, #tpu.memory_space<smem>>
    %12 = vector.broadcast %11 : f32 to vector<1x128xf32>
    %13 = arith.addf %10, %12 : vector<1x128xf32>
    %cst = arith.constant 0.000000e+00 : f32
    %14 = vector.broadcast %cst : f32 to vector<1x128xf32>
    %15 = arith.maximumf %13, %14 : vector<1x128xf32>
    %c0_6 = arith.constant 0 : index
    %16 = memref.load %arg4[%c0_6] : memref<5xf32, #tpu.memory_space<smem>>
    %17 = vector.broadcast %16 : f32 to vector<1x128xf32>
    %18 = arith.mulf %15, %17 : vector<1x128xf32>
    %c1_7 = arith.constant 1 : index
    %19 = memref.load %arg2[%c1_7] : memref<10xf32, #tpu.memory_space<smem>>
    %20 = vector.broadcast %19 : f32 to vector<1x128xf32>
    %21 = arith.mulf %1, %20 : vector<1x128xf32>
    %c6 = arith.constant 6 : index
    %22 = memref.load %arg2[%c6] : memref<10xf32, #tpu.memory_space<smem>>
    %23 = vector.broadcast %22 : f32 to vector<1x128xf32>
    %24 = arith.mulf %3, %23 : vector<1x128xf32>
    %25 = arith.addf %21, %24 : vector<1x128xf32>
    %c1_8 = arith.constant 1 : index
    %26 = memref.load %arg3[%c1_8] : memref<5xf32, #tpu.memory_space<smem>>
    %27 = vector.broadcast %26 : f32 to vector<1x128xf32>
    %28 = arith.addf %25, %27 : vector<1x128xf32>
    %cst_9 = arith.constant 0.000000e+00 : f32
    %29 = vector.broadcast %cst_9 : f32 to vector<1x128xf32>
    %30 = arith.maximumf %28, %29 : vector<1x128xf32>
    %c1_10 = arith.constant 1 : index
    %31 = memref.load %arg4[%c1_10] : memref<5xf32, #tpu.memory_space<smem>>
    %32 = vector.broadcast %31 : f32 to vector<1x128xf32>
    %33 = arith.mulf %30, %32 : vector<1x128xf32>
    %34 = arith.addf %18, %33 : vector<1x128xf32>
    %c2 = arith.constant 2 : index
    %35 = memref.load %arg2[%c2] : memref<10xf32, #tpu.memory_space<smem>>
    %36 = vector.broadcast %35 : f32 to vector<1x128xf32>
    %37 = arith.mulf %1, %36 : vector<1x128xf32>
    %c7 = arith.constant 7 : index
    %38 = memref.load %arg2[%c7] : memref<10xf32, #tpu.memory_space<smem>>
    %39 = vector.broadcast %38 : f32 to vector<1x128xf32>
    %40 = arith.mulf %3, %39 : vector<1x128xf32>
    %41 = arith.addf %37, %40 : vector<1x128xf32>
    %c2_11 = arith.constant 2 : index
    %42 = memref.load %arg3[%c2_11] : memref<5xf32, #tpu.memory_space<smem>>
    %43 = vector.broadcast %42 : f32 to vector<1x128xf32>
    %44 = arith.addf %41, %43 : vector<1x128xf32>
    %cst_12 = arith.constant 0.000000e+00 : f32
    %45 = vector.broadcast %cst_12 : f32 to vector<1x128xf32>
    %46 = arith.maximumf %44, %45 : vector<1x128xf32>
    %c2_13 = arith.constant 2 : index
    %47 = memref.load %arg4[%c2_13] : memref<5xf32, #tpu.memory_space<smem>>
    %48 = vector.broadcast %47 : f32 to vector<1x128xf32>
    %49 = arith.mulf %46, %48 : vector<1x128xf32>
    %50 = arith.addf %34, %49 : vector<1x128xf32>
    %c3 = arith.constant 3 : index
    %51 = memref.load %arg2[%c3] : memref<10xf32, #tpu.memory_space<smem>>
    %52 = vector.broadcast %51 : f32 to vector<1x128xf32>
    %53 = arith.mulf %1, %52 : vector<1x128xf32>
    %c8 = arith.constant 8 : index
    %54 = memref.load %arg2[%c8] : memref<10xf32, #tpu.memory_space<smem>>
    %55 = vector.broadcast %54 : f32 to vector<1x128xf32>
    %56 = arith.mulf %3, %55 : vector<1x128xf32>
    %57 = arith.addf %53, %56 : vector<1x128xf32>
    %c3_14 = arith.constant 3 : index
    %58 = memref.load %arg3[%c3_14] : memref<5xf32, #tpu.memory_space<smem>>
    %59 = vector.broadcast %58 : f32 to vector<1x128xf32>
    %60 = arith.addf %57, %59 : vector<1x128xf32>
    %cst_15 = arith.constant 0.000000e+00 : f32
    %61 = vector.broadcast %cst_15 : f32 to vector<1x128xf32>
    %62 = arith.maximumf %60, %61 : vector<1x128xf32>
    %c3_16 = arith.constant 3 : index
    %63 = memref.load %arg4[%c3_16] : memref<5xf32, #tpu.memory_space<smem>>
    %64 = vector.broadcast %63 : f32 to vector<1x128xf32>
    %65 = arith.mulf %62, %64 : vector<1x128xf32>
    %66 = arith.addf %50, %65 : vector<1x128xf32>
    %c4 = arith.constant 4 : index
    %67 = memref.load %arg2[%c4] : memref<10xf32, #tpu.memory_space<smem>>
    %68 = vector.broadcast %67 : f32 to vector<1x128xf32>
    %69 = arith.mulf %1, %68 : vector<1x128xf32>
    %c9 = arith.constant 9 : index
    %70 = memref.load %arg2[%c9] : memref<10xf32, #tpu.memory_space<smem>>
    %71 = vector.broadcast %70 : f32 to vector<1x128xf32>
    %72 = arith.mulf %3, %71 : vector<1x128xf32>
    %73 = arith.addf %69, %72 : vector<1x128xf32>
    %c4_17 = arith.constant 4 : index
    %74 = memref.load %arg3[%c4_17] : memref<5xf32, #tpu.memory_space<smem>>
    %75 = vector.broadcast %74 : f32 to vector<1x128xf32>
    %76 = arith.addf %73, %75 : vector<1x128xf32>
    %cst_18 = arith.constant 0.000000e+00 : f32
    %77 = vector.broadcast %cst_18 : f32 to vector<1x128xf32>
    %78 = arith.maximumf %76, %77 : vector<1x128xf32>
    %c4_19 = arith.constant 4 : index
    %79 = memref.load %arg4[%c4_19] : memref<5xf32, #tpu.memory_space<smem>>
    %80 = vector.broadcast %79 : f32 to vector<1x128xf32>
    %81 = arith.mulf %78, %80 : vector<1x128xf32>
    %82 = arith.addf %66, %81 : vector<1x128xf32>
    %c0_20 = arith.constant 0 : index
    %83 = memref.load %arg5[%c0_20] : memref<1xf32, #tpu.memory_space<smem>>
    %84 = vector.broadcast %83 : f32 to vector<1x128xf32>
    %85 = arith.addf %82, %84 : vector<1x128xf32>
    %86 = math.tanh %85 : vector<1x128xf32>
    %cst_21 = arith.constant 5.000000e-01 : f32
    %87 = vector.broadcast %cst_21 : f32 to vector<1x128xf32>
    %88 = arith.mulf %86, %87 : vector<1x128xf32>
    %cst_22 = arith.constant 5.000000e-01 : f32
    %89 = vector.broadcast %cst_22 : f32 to vector<1x128xf32>
    %90 = arith.addf %88, %89 : vector<1x128xf32>
    %c0_23 = arith.constant 0 : index
    %c0_24 = arith.constant 0 : index
    %91 = vector.load %arg6[%c0_23, %c0_24] : memref<1x128xf32, #tpu.memory_space<vmem>>, vector<1x128xf32>
    tpu.vector_store %arg6[%c0_23, %c0_24], %90 {strides = array<i32>} : memref<1x128xf32, #tpu.memory_space<vmem>>, vector<1x128xf32>,
    return
  }
  func.func @transform_0(%arg0: i32) -> (i32, i32, i32) {
    %c0_i32 = arith.constant 0 : i32
    %c0_i32_0 = arith.constant 0 : i32
    %c0_i32_1 = arith.constant 0 : i32
    return %c0_i32, %arg0, %c0_i32_0 : i32, i32, i32
  }
  func.func @transform_1(%arg0: i32) -> i32 {
    %c0_i32 = arith.constant 0 : i32
    %c0_i32_0 = arith.constant 0 : i32
    return %c0_i32 : i32
  }
  func.func @transform_2(%arg0: i32) -> i32 {
    %c0_i32 = arith.constant 0 : i32
    %c0_i32_0 = arith.constant 0 : i32
    return %c0_i32 : i32
  }
  func.func @transform_3(%arg0: i32) -> i32 {
    %c0_i32 = arith.constant 0 : i32
    %c0_i32_0 = arith.constant 0 : i32
    return %c0_i32 : i32
  }
  func.func @transform_4(%arg0: i32) -> i32 {
    %c0_i32 = arith.constant 0 : i32
    %c0_i32_0 = arith.constant 0 : i32
    return %c0_i32 : i32
  }
  func.func @transform_5(%arg0: i32) -> (i32, i32) {
    %c0_i32 = arith.constant 0 : i32
    %c0_i32_0 = arith.constant 0 : i32
    return %arg0, %c0_i32 : i32, i32
  }
}

</mosaic_0001>

<bundles_post_ra>
// kernel: mlp_forward.1
= control target key start
LH: loop header
LB: loop body
LE: loop exit
PB: predicated region body
PF: predicated region fallthrough
CT: control target
= control target key end

     0   :  { %11 = vsyncpa [#allocation4], 0  ;;  %s282_s0 = inlined_call_operand.vmem [shape: f32[2,1,128], index: 0, kind: input, shape index: {}]   ;;  %s283_s1 = inlined_call_operand.vmem [shape: f32[10], index: 1, kind: input, shape index: {}]   ;;  %s284_s2 = inlined_call_operand.vmem [shape: f32[5], index: 2, kind: input, shape index: {}]   ;;  %s285_s3 = inlined_call_operand.vmem [shape: f32[5], index: 3, kind: input, shape index: {}]   ;;  %s286_s4 = inlined_call_operand.<no memory space> [shape: f32[1], index: 4, kind: input, shape index: {}]   ;;  %s287_s5 = inlined_call_operand.vmem [shape: f32[1,128], index: 5, kind: output, shape index: {}]  }
   0x1   :  { %12 = vsyncpa [#allocation6], 0  ;;  %s31_s20 = sshll.u32 %s284_s2, 4  ;;  %s21_s23 = sshll.u32 %s283_s1, 4  ;;  %s32_s20 = int_to_ptr.vmem [resolvable:$true] %s31_s20  ;;  %s22_s23 = int_to_ptr.vmem [resolvable:$true] %s21_s23 }
   0x2   :  { %s170_s24 = scalar_lea.vmem %s32_s20, 16  ;;  %p175_p1 = scmp.lt.s32.totalorder %s32_s20, %s32_s20 }
   0x3   :  { %p171_p0 = scmp.ne.s32.totalorder %s32_s20, %s170_s24  ;;  %p176_p2 = scmp.lt.s32.totalorder %s170_s24, %s170_s24 }
   0x5   :  { %p177_p3 = por %p176_p2, %p175_p1 }
   0x7   :  { %p178_p4 = pnand %p177_p3, %p171_p0 }
   0x9   :  { %181 = shalt.err (!%p178_p4)
}
   0xa   :  { %s210_s25 = smov [#allocation5]   ;;  %s182_s26 = scalar_lea.vmem %s22_s23, 16 }
   0xb   :  { %34 = dma.vmem_to_smem %s32_s20, 16, %s210_s25, [#allocation6]  }
   0xc   :  { %p183_p5 = scmp.ne.s32.totalorder %s22_s23, %s182_s26  ;;  %p187_p6 = scmp.lt.s32.totalorder %s22_s23, %s22_s23 }
   0xd   :  { %p188_p7 = scmp.lt.s32.totalorder %s182_s26, %s182_s26 }
   0xf   :  { %p189_p8 = por %p188_p7, %p187_p6 }
  0x11   :  { %p190_p9 = pnand %p189_p8, %p183_p5 }
  0x13   :  { %193 = shalt.err (!%p190_p9)
}
  0x14   :  { %s211_s2 = smov [#allocation3]   ;;  %s41_s28 = sshll.u32 %s285_s3, 4  ;;  %s42_s28 = int_to_ptr.vmem [resolvable:$true] %s41_s28 }
  0x15   :  { %24 = dma.vmem_to_smem %s22_s23, 16, %s211_s2, [#allocation4]  }
  0x16   :  { %s194_s29 = scalar_lea.vmem %s42_s28, 16  ;;  %p199_p11 = scmp.lt.s32.totalorder %s42_s28, %s42_s28 }
  0x17   :  { %p195_p10 = scmp.ne.s32.totalorder %s42_s28, %s194_s29  ;;  %p200_p12 = scmp.lt.s32.totalorder %s194_s29, %s194_s29 }
  0x19   :  { %p201_p13 = por %p200_p12, %p199_p11 }
  0x1b   :  { %p202_p0 = pnand %p201_p13, %p195_p10 }
  0x1d   :  { %205 = shalt.err (!%p202_p0)
}
  0x1e   :  { %s212_s30 = smov [#allocation7]  }
  0x1f   :  { %44 = dma.vmem_to_smem %s42_s28, 16, %s212_s30, [#allocation6]  }
  0x20   :  { %206 = dma.done.wait [#allocation4], 16  }
  0x21   :  { %207 = vsyncadd [#allocation4], 4294967280 }
  0x22   :  { %208 = dma.done.wait [#allocation6], 32  }
  0x23   :  { %209 = vsyncadd [#allocation6], 4294967264 }
  0x24   :  { %56 = sfence }
  0x25   :  { %s60_s6 = sld [smem:[#allocation3]]  ;;  %v57_v0 = vld [vmem:[%s282_s0] sm:$0x1]  ;;  %v147_v1 = vld [vmem:[%s282_s0 + $0x1] sm:$0x1]  ;;  %v135_v55 = vstv %s286_s4 }
  0x26   :  { %s148_s7 = sld [smem:[#allocation3 + $0x5]] }
  0x27   :  { %s67_s8 = sld [smem:[#allocation5]] }
  0x28   :  { %s252_s9 = sld [smem:[#allocation7]] }
  0x29   :  { %s149_s11 = sld [smem:[#allocation3 + $0x1]] }
  0x2a   :  { %s150_s14 = sld [smem:[#allocation3 + $0x6]] }
  0x2b   :  { %v61_v2 = vstv %s60_s6  ;;  %s151_s15 = sld [smem:[#allocation5 + $0x1]] }
  0x2c   :  { %v62_v3 = vmul.f32 %v61_v2, %v57_v0  ;;  %v64_v4 = vstv %s148_s7  ;;  %s260_s16 = sld [smem:[#allocation7 + $0x1]] }
  0x2d   :  { %v65_v5 = vmul.f32 %v147_v1, %v64_v4  ;;  %s153_s17 = sld [smem:[#allocation3 + $0x2]]  ;;  %v68_v6 = vstv %s67_s8 }
  0x2e   :  { %s154_s18 = sld [smem:[#allocation3 + $0x7]]  ;;  %v72_v17 = vstv %s252_s9 }
  0x2f   :  { %v66_v7 = vadd.f32 %v65_v5, %v62_v3  ;;  %v75_v8 = vstv %s149_s11  ;;  %s262_s19 = sld [smem:[#allocation5 + $0x2]] }
  0x30   :  { %v76_v9 = vmul.f32 %v75_v8, %v57_v0  ;;  %v78_v10 = vstv %s150_s14  ;;  %s264_s20 = sld [smem:[#allocation7 + $0x2]] }
  0x31   :  { %v69_v11 = vadd.f32 %v68_v6, %v66_v7  ;;  %v79_v12 = vmul.f32 %v147_v1, %v78_v10  ;;  %s157_s0 = sld [smem:[#allocation3 + $0x3]]  ;;  %v82_v13 = vstv %s151_s15 }
  0x32   :  { %s158_s21 = sld [smem:[#allocation3 + $0x8]]  ;;  %v86_v22 = vstv %s260_s16 }
  0x33   :  { %v70_v14 = vmax.f32 %v69_v11, 0.0  ;;  %v80_v15 = vadd.f32 %v79_v12, %v76_v9  ;;  %v90_v16 = vstv %s153_s17  ;;  %s266_s22 = sld [smem:[#allocation5 + $0x3]] }
  0x34   :  { %v91_v18 = vmul.f32 %v90_v16, %v57_v0  ;;  %v93_v19 = vstv %s154_s18  ;;  %s269_s23 = sld [smem:[#allocation7 + $0x3]] }
  0x35   :  { %v83_v20 = vadd.f32 %v82_v13, %v80_v15  ;;  %v94_v21 = vmul.f32 %v147_v1, %v93_v19  ;;  %s161_s24 = sld [smem:[#allocation3 + $0x4]]  ;;  %v97_v23 = vstv %s262_s19  ;;  %v73_v24 = vmul.f32 %v72_v17, %v70_v14 }
  0x36   :  { %s162_s25 = sld [smem:[#allocation3 + $0x9]]  ;;  %v101_v33 = vstv %s264_s20 }
  0x37   :  { %v84_v25 = vmax.f32 %v83_v20, 0.0  ;;  %v95_v26 = vadd.f32 %v94_v21, %v91_v18  ;;  %v105_v27 = vstv %s157_s0  ;;  %s163_s26 = sld [smem:[#allocation5 + $0x4]] }
  0x38   :  { %v106_v28 = vmul.f32 %v105_v27, %v57_v0  ;;  %v108_v29 = vstv %s158_s21  ;;  %s164_s2 = sld [smem:[#allocation7 + $0x4]] }
  0x39   :  { %v87_v30 = vmul.f32 %v86_v22, %v84_v25  ;;  %v98_v31 = vadd.f32 %v97_v23, %v95_v26  ;;  %v109_v32 = vmul.f32 %v147_v1, %v108_v29  ;;  %v112_v34 = vstv %s266_s22 }
  0x3a   :  { %v116_v44 = vstv %s269_s23 }
  0x3b   :  { %v88_v35 = vadd.f32 %v87_v30, %v73_v24  ;;  %v99_v36 = vmax.f32 %v98_v31, 0.0  ;;  %v110_v37 = vadd.f32 %v109_v32, %v106_v28  ;;  %v120_v38 = vstv %s161_s24 }
  0x3c   :  { %v121_v39 = vmul.f32 %v120_v38, %v57_v0  ;;  %v123_v40 = vstv %s162_s25 }
  0x3d   :  { %v102_v41 = vmul.f32 %v101_v33, %v99_v36  ;;  %v113_v42 = vadd.f32 %v112_v34, %v110_v37  ;;  %v124_v43 = vmul.f32 %v147_v1, %v123_v40  ;;  %v127_v45 = vstv %s163_s26 }
  0x3e   :  { %v131_v51 = vstv %s164_s2 }
  0x3f   :  { %v103_v46 = vadd.f32 %v102_v41, %v88_v35  ;;  %v114_v47 = vmax.f32 %v113_v42, 0.0  ;;  %v125_v48 = vadd.f32 %v124_v43, %v121_v39 }
  0x41   :  { %v117_v49 = vmul.f32 %v116_v44, %v114_v47  ;;  %v128_v50 = vadd.f32 %v127_v45, %v125_v48 }
  0x43   :  { %v118_v52 = vadd.f32 %v117_v49, %v103_v46  ;;  %v129_v53 = vmax.f32 %v128_v50, 0.0 }
  0x45   :  { %v132_v54 = vmul.f32 %v131_v51, %v129_v53 }
  0x47   :  { %v133_v56 = vadd.f32 %v132_v54, %v118_v52 }
  0x49   :  { %v136_v57 = vadd.f32 %v135_v55, %v133_v56 }
  0x4b   :  { %168 = vtanh.f32 %v136_v57 }
  0x58   :  { %v169_v58 = vpop.eup %168 }
  0x59   :  { %v138_v59 = vmul.f32 0.5, %v169_v58 }
  0x5b   :  { %v139_v60 = vadd.f32 0.5, %v138_v59 }
  0x5d   :  { %140 = vst [vmem:[%s287_s5] sm:$0x1] %v139_v60 }
  0x5e   :  { %145 = vsyncpa [#allocation4], 1 }
  0x5f   :  { %146 = vsyncpa [#allocation6], 1 }

</bundles_post_ra>
